<compile_context>
chip_gen: v5e
topology: v5e:2x2
jax: 0.10.0
libtpu: 0.0.40
codegen_flags: <defaults>
</compile_context>

<pallas_src>
import jax
import jax.numpy as jnp
from jax.experimental import pallas as pl
from jax.experimental.pallas import tpu as pltpu


def _round_up(x: int, m: int) -> int:
    return ((x + m - 1) // m) * m


def _bilinear_matrix(n_in: int, n_out: int) -> jnp.ndarray:
    """Row-interpolation matrix for bilinear upsampling with align_corners=True."""
    if n_out == 1:
        src = jnp.zeros((1,), jnp.float32)
    else:
        src = jnp.arange(n_out, dtype=jnp.float32) * (n_in - 1) / (n_out - 1)
    lo = jnp.floor(src).astype(jnp.int32)
    hi = jnp.minimum(lo + 1, n_in - 1)
    frac = src - lo.astype(jnp.float32)
    rows = jnp.arange(n_out)
    m = jnp.zeros((n_out, n_in), jnp.float32)
    m = m.at[rows, lo].add(1.0 - frac)
    m = m.at[rows, hi].add(frac)
    return m


def _vmem_limit_bytes() -> int:
    """Generation-aware VMEM limit (<= 48 MiB; half of physical capacity)."""
    try:
        cap = pltpu.get_tpu_info().vmem_capacity_bytes
    except Exception:  # pragma: no cover - conservative fallback
        cap = 64 * 1024 * 1024
    return min(cap // 2, 48 * 1024 * 1024)


def _pick_row_tile(rows: int, bytes_per_row: int, vmem_limit: int,
                   resident_bytes: int) -> int:
    """Largest row tile fitting the double-buffered VMEM budget, with a
    guaranteed minimum number of grid steps for pipelining / megacore."""
    budget = max(int(vmem_limit * 0.6) - resident_bytes, 2 * 16 * bytes_per_row)
    tr = 16
    for cand in (1024, 512, 256, 128, 64, 32, 16):
        if 2 * cand * bytes_per_row <= budget:
            tr = cand
            break
    while tr > 16 and pl.cdiv(rows, tr) < 4:
        tr //= 2
    return tr


def _conv3x3_kernel(p_ref, w3_ref, b3_ref, o_ref):
    # p_ref : (TR, K9p) bf16 im2col patches at LOW resolution
    # w3_ref: (K9p, Cop) bf16 packed 3x3 weights;  b3_ref: (1, Cop) f32
    # o_ref : (TR, Cop) bf16
    acc = jnp.dot(p_ref[...], w3_ref[...], preferred_element_type=jnp.float32)
    o_ref[...] = (acc + b3_ref[...]).astype(o_ref.dtype)


def _mul_conv1x1_kernel(hi_ref, low_ref, w1_ref, b1_ref, o_ref):
    # hi_ref : (TR, Cop) bf16 upsampled high branch (bias already included)
    # low_ref: (TR, Clp) bf16;  w1_ref: (Clp, Cop) bf16;  b1_ref: (1, Cop) f32
    # o_ref  : (TR, Cop) f32
    low = jnp.dot(low_ref[...], w1_ref[...],
                  preferred_element_type=jnp.float32) + b1_ref[...]
    o_ref[...] = (hi_ref[...].astype(jnp.float32) * low).astype(o_ref.dtype)


@jax.jit
def sematic_embed_block(high_nchw, low_nchw, w3_hwio, b3, w1_io, b1):
    """Forward pass of SematicEmbbedBlock.

    high_nchw: (N, Ch, H, W)   float32
    low_nchw : (N, Cl, 2H, 2W) float32
    returns  : (N, Co, 2H, 2W) float32
    """
    n, ch, h, w = high_nchw.shape
    _, cl, ho, wo = low_nchw.shape
    co = w3_hwio.shape[-1]
    assert ho == 2 * h and wo == 2 * w

    k9 = 9 * ch
    k9p = _round_up(k9, 128)
    cl_p = _round_up(cl, 128)
    co_p = _round_up(co, 128)
    rows_lo = n * h * w
    rows_hi = n * ho * wo
    vmem_limit = _vmem_limit_bytes()

    # ---- wrapper plumbing: low-res im2col in bf16 only ---------------------
    high = jnp.transpose(high_nchw, (0, 2, 3, 1)).astype(jnp.bfloat16)  # NHWC
    hp = jnp.pad(high, ((0, 0), (1, 1), (1, 1), (0, 0)))
    patches = jnp.concatenate(
        [hp[:, dy:dy + h, dx:dx + w, :] for dy in range(3) for dx in range(3)],
        axis=-1)                                   # (N, H, W, 9*Ch), tap order (dy, dx, c)
    patches2 = patches.reshape(rows_lo, k9)

    # Padded / packed parameters (zero padding -> exact results after slicing).
    w3p = jnp.pad(w3_hwio.reshape(k9, co).astype(jnp.bfloat16),
                  ((0, k9p - k9), (0, co_p - co)))
    b3p = jnp.pad(b3.reshape(1, co).astype(jnp.float32), ((0, 0), (0, co_p - co)))
    w1p = jnp.pad(w1_io.astype(jnp.bfloat16), ((0, cl_p - cl), (0, co_p - co)))
    b1p = jnp.pad(b1.reshape(1, co).astype(jnp.float32), ((0, 0), (0, co_p - co)))

    # ---- kernel A: 3x3 conv (K = 9*Ch) at LOW resolution -------------------
    bytes_row_a = k9p * 2 + co_p * 2
    resident_a = 2 * (k9p * co_p * 2) + 2 * (co_p * 4)
    tr_a = _pick_row_tile(rows_lo, bytes_row_a, vmem_limit, resident_a)
    rows_lo_pad = _round_up(rows_lo, tr_a)
    pa = jnp.pad(patches2, ((0, rows_lo_pad - rows_lo), (0, k9p - k9)))

    conv_lo = pl.pallas_call(
        _conv3x3_kernel,
        out_shape=jax.ShapeDtypeStruct((rows_lo_pad, co_p), jnp.bfloat16),
        grid=(rows_lo_pad // tr_a,),
        in_specs=[
            pl.BlockSpec((tr_a, k9p), lambda i: (i, 0)),
            pl.BlockSpec((k9p, co_p), lambda i: (0, 0)),
            pl.BlockSpec((1, co_p), lambda i: (0, 0)),
        ],
        out_specs=pl.BlockSpec((tr_a, co_p), lambda i: (i, 0)),
        compiler_params=pltpu.CompilerParams(
            dimension_semantics=("parallel",),
            vmem_limit_bytes=vmem_limit),
    )(pa, w3p, b3p)

    # ---- separable bilinear x2 (align_corners=True) on the Co-wide output --
    z = conv_lo[:rows_lo].reshape(n, h, w, co_p)            # bf16
    a16 = _bilinear_matrix(h, ho).astype(jnp.bfloat16)       # (Ho, H)
    b16 = _bilinear_matrix(w, wo).astype(jnp.bfloat16)       # (Wo, W)
    zu = jnp.einsum("oh,nhwc->nowc", a16, z,
                    preferred_element_type=jnp.float32).astype(jnp.bfloat16)
    zu = jnp.einsum("pw,nowc->nopc", b16, zu,
                    preferred_element_type=jnp.float32).astype(jnp.bfloat16)
    high_up = zu.reshape(rows_hi, co_p)                      # (N*Ho*Wo, Cop) bf16

    # ---- kernel B: 1x1 conv + elementwise product at HIGH resolution -------
    low = jnp.transpose(low_nchw, (0, 2, 3, 1)).astype(jnp.bfloat16)   # NHWC
    low2 = low.reshape(rows_hi, cl)

    bytes_row_b = co_p * 2 + cl_p * 2 + co_p * 4
    resident_b = 2 * (cl_p * co_p * 2) + 2 * (co_p * 4)
    tr_b = _pick_row_tile(rows_hi, bytes_row_b, vmem_limit, resident_b)
    rows_hi_pad = _round_up(rows_hi, tr_b)
    high_up_p = jnp.pad(high_up, ((0, rows_hi_pad - rows_hi), (0, 0)))
    low2_p = jnp.pad(low2, ((0, rows_hi_pad - rows_hi), (0, cl_p - cl)))

    out2 = pl.pallas_call(
        _mul_conv1x1_kernel,
        out_shape=jax.ShapeDtypeStruct((rows_hi_pad, co_p), jnp.float32),
        grid=(rows_hi_pad // tr_b,),
        in_specs=[
            pl.BlockSpec((tr_b, co_p), lambda i: (i, 0)),
            pl.BlockSpec((tr_b, cl_p), lambda i: (i, 0)),
            pl.BlockSpec((cl_p, co_p), lambda i: (0, 0)),
            pl.BlockSpec((1, co_p), lambda i: (0, 0)),
        ],
        out_specs=pl.BlockSpec((tr_b, co_p), lambda i: (i, 0)),
        compiler_params=pltpu.CompilerParams(
            dimension_semantics=("parallel",),
            vmem_limit_bytes=vmem_limit),
    )(high_up_p, low2_p, w1p, b1p)

    out_nhwc = out2[:rows_hi, :co].reshape(n, ho, wo, co)
    return jnp.transpose(out_nhwc, (0, 3, 1, 2))             # NCHW, as the module


def _reference(high_nchw, low_nchw, w3_hwio, b3, w1_io, b1):
    """Pure-JAX f32 reference (same math, no Pallas) for a correctness check."""
    high = jnp.transpose(high_nchw, (0, 2, 3, 1))
    low = jnp.transpose(low_nchw, (0, 2, 3, 1))
    n, h, w, ch = high.shape
    ho, wo = 2 * h, 2 * w

    y = jax.lax.conv_general_dilated(
        high, w3_hwio, window_strides=(1, 1), padding="SAME",
        dimension_numbers=("NHWC", "HWIO", "NHWC")) + b3

    a_mat = _bilinear_matrix(h, ho)
    b_mat = _bilinear_matrix(w, wo)
    z = jnp.einsum("oh,nhwc->nowc", a_mat, y)
    z = jnp.einsum("pw,nowc->nopc", b_mat, z)

    lo = jnp.einsum("nhwc,cd->nhwd", low, w1_io) + b1
    out = z * lo
    return jnp.transpose(out, (0, 3, 1, 2))


if __name__ == "__main__":
    key = jax.random.PRNGKey(0)
    k1, k2, k3, k4, k5, k6 = jax.random.split(key, 6)

    N, CH, CL, CO = 2, 4, 8, 16
    H = W = 16

    high_x = jax.random.normal(k1, (N, CH, H, W), jnp.float32)
    low_x = jax.random.normal(k2, (N, CL, 2 * H, 2 * W), jnp.float32)

    # Deterministic synthetic parameters (shapes from the module __init__).
    w3 = 0.1 * jax.random.normal(k3, (3, 3, CH, CO), jnp.float32)   # HWIO
    b3 = 0.1 * jax.random.normal(k4, (CO,), jnp.float32)
    w1 = 0.1 * jax.random.normal(k5, (CL, CO), jnp.float32)         # in -> out
    b1 = 0.1 * jax.random.normal(k6, (CO,), jnp.float32)

    out = sematic_embed_block(high_x, low_x, w3, b3, w1, b1)
    out = jax.block_until_ready(out)

    ref = _reference(high_x, low_x, w3, b3, w1, b1)
    assert out.shape == (N, CO, 2 * H, 2 * W), out.shape
    # bf16 matmul operands / intermediates with f32 accumulation -> bf16-level tolerance.
    assert jnp.allclose(out, ref, atol=5e-2, rtol=5e-2), (
        float(jnp.max(jnp.abs(out - ref))))

    print("KERNEL_OK")
</pallas_src>

<mosaic_0001>
module attributes {stable_mosaic.version = 11 : i64} {
  func.func @_conv3x3_kernel(%arg0: i32, %arg1: memref<128x128xbf16, #tpu.memory_space<vmem>>, %arg2: memref<128x128xbf16, #tpu.memory_space<vmem>>, %arg3: memref<1x128xf32, #tpu.memory_space<vmem>>, %arg4: memref<128x128xbf16, #tpu.memory_space<vmem>>) attributes {dimension_semantics = [#tpu.dimension_semantics<parallel>], iteration_bounds = array<i64: 4>, scalar_prefetch = 0 : i64, scratch_operands = 0 : i64, tpu.core_type = #tpu.core_type<tc>, window_params = [{transform_indices = @transform_0, window_bounds = array<i64: 128, 128>}, {pipeline_mode = #tpu.pipeline_mode<synchronous>, transform_indices = @transform_1, window_bounds = array<i64: 128, 128>}, {pipeline_mode = #tpu.pipeline_mode<synchronous>, transform_indices = @transform_2, window_bounds = array<i64: 1, 128>}, {transform_indices = @transform_3, window_bounds = array<i64: 128, 128>}]} {
    %c0 = arith.constant 0 : index
    %c0_0 = arith.constant 0 : index
    %0 = vector.load %arg1[%c0, %c0_0] : memref<128x128xbf16, #tpu.memory_space<vmem>>, vector<128x128xbf16>
    %c0_1 = arith.constant 0 : index
    %c0_2 = arith.constant 0 : index
    %1 = vector.load %arg2[%c0_1, %c0_2] : memref<128x128xbf16, #tpu.memory_space<vmem>>, vector<128x128xbf16>
    %cst = arith.constant dense<0.000000e+00> : vector<128x128xf32>
    %2 = tpu.matmul %0, %1, %cst {dimension_numbers = #tpu.dot_dimension_numbers<[1], [0], [0], [1], [0, 0, 1, 1], [], []>} : vector<128x128xbf16>, vector<128x128xbf16>, vector<128x128xf32> -> vector<128x128xf32>
    %c0_3 = arith.constant 0 : index
    %c0_4 = arith.constant 0 : index
    %3 = vector.load %arg3[%c0_3, %c0_4] : memref<1x128xf32, #tpu.memory_space<vmem>>, vector<1x128xf32>
    %4 = vector.broadcast %3 : vector<1x128xf32> to vector<128x128xf32>
    %5 = arith.addf %2, %4 : vector<128x128xf32>
    %6 = arith.truncf %5 : vector<128x128xf32> to vector<128x128xbf16>
    %c0_5 = arith.constant 0 : index
    %c0_6 = arith.constant 0 : index
    %7 = vector.load %arg4[%c0_5, %c0_6] : memref<128x128xbf16, #tpu.memory_space<vmem>>, vector<128x128xbf16>
    tpu.vector_store %arg4[%c0_5, %c0_6], %6 {strides = array<i32>} : memref<128x128xbf16, #tpu.memory_space<vmem>>, vector<128x128xbf16>,
    return
  }
  func.func @transform_0(%arg0: i32) -> (i32, i32) {
    %c0_i32 = arith.constant 0 : i32
    %c0_i32_0 = arith.constant 0 : i32
    return %arg0, %c0_i32 : i32, i32
  }
  func.func @transform_1(%arg0: i32) -> (i32, i32) {
    %c0_i32 = arith.constant 0 : i32
    %c0_i32_0 = arith.constant 0 : i32
    %c0_i32_1 = arith.constant 0 : i32
    return %c0_i32, %c0_i32_0 : i32, i32
  }
  func.func @transform_2(%arg0: i32) -> (i32, i32) {
    %c0_i32 = arith.constant 0 : i32
    %c0_i32_0 = arith.constant 0 : i32
    %c0_i32_1 = arith.constant 0 : i32
    return %c0_i32, %c0_i32_0 : i32, i32
  }
  func.func @transform_3(%arg0: i32) -> (i32, i32) {
    %c0_i32 = arith.constant 0 : i32
    %c0_i32_0 = arith.constant 0 : i32
    return %arg0, %c0_i32 : i32, i32
  }
}

module attributes {stable_mosaic.version = 11 : i64} {
  func.func @_mul_conv1x1_kernel(%arg0: i32, %arg1: memref<512x128xbf16, #tpu.memory_space<vmem>>, %arg2: memref<512x128xbf16, #tpu.memory_space<vmem>>, %arg3: memref<128x128xbf16, #tpu.memory_space<vmem>>, %arg4: memref<1x128xf32, #tpu.memory_space<vmem>>, %arg5: memref<512x128xf32, #tpu.memory_space<vmem>>) attributes {dimension_semantics = [#tpu.dimension_semantics<parallel>], iteration_bounds = array<i64: 4>, scalar_prefetch = 0 : i64, scratch_operands = 0 : i64, tpu.core_type = #tpu.core_type<tc>, window_params = [{transform_indices = @transform_0, window_bounds = array<i64: 512, 128>}, {transform_indices = @transform_1, window_bounds = array<i64: 512, 128>}, {pipeline_mode = #tpu.pipeline_mode<synchronous>, transform_indices = @transform_2, window_bounds = array<i64: 128, 128>}, {pipeline_mode = #tpu.pipeline_mode<synchronous>, transform_indices = @transform_3, window_bounds = array<i64: 1, 128>}, {transform_indices = @transform_4, window_bounds = array<i64: 512, 128>}]} {
    %c0 = arith.constant 0 : index
    %c0_0 = arith.constant 0 : index
    %0 = vector.load %arg2[%c0, %c0_0] : memref<512x128xbf16, #tpu.memory_space<vmem>>, vector<512x128xbf16>
    %c0_1 = arith.constant 0 : index
    %c0_2 = arith.constant 0 : index
    %1 = vector.load %arg3[%c0_1, %c0_2] : memref<128x128xbf16, #tpu.memory_space<vmem>>, vector<128x128xbf16>
    %cst = arith.constant dense<0.000000e+00> : vector<512x128xf32>
    %2 = tpu.matmul %0, %1, %cst {dimension_numbers = #tpu.dot_dimension_numbers<[1], [0], [0], [1], [0, 0, 1, 1], [], []>} : vector<512x128xbf16>, vector<128x128xbf16>, vector<512x128xf32> -> vector<512x128xf32>
    %c0_3 = arith.constant 0 : index
    %c0_4 = arith.constant 0 : index
    %3 = vector.load %arg4[%c0_3, %c0_4] : memref<1x128xf32, #tpu.memory_space<vmem>>, vector<1x128xf32>
    %4 = vector.broadcast %3 : vector<1x128xf32> to vector<512x128xf32>
    %5 = arith.addf %2, %4 : vector<512x128xf32>
    %c0_5 = arith.constant 0 : index
    %c0_6 = arith.constant 0 : index
    %6 = vector.load %arg1[%c0_5, %c0_6] : memref<512x128xbf16, #tpu.memory_space<vmem>>, vector<512x128xbf16>
    %7 = arith.extf %6 : vector<512x128xbf16> to vector<512x128xf32>
    %8 = arith.mulf %7, %5 : vector<512x128xf32>
    %c0_7 = arith.constant 0 : index
    %c0_8 = arith.constant 0 : index
    %9 = vector.load %arg5[%c0_7, %c0_8] : memref<512x128xf32, #tpu.memory_space<vmem>>, vector<512x128xf32>
    tpu.vector_store %arg5[%c0_7, %c0_8], %8 {strides = array<i32>} : memref<512x128xf32, #tpu.memory_space<vmem>>, vector<512x128xf32>,
    return
  }
  func.func @transform_0(%arg0: i32) -> (i32, i32) {
    %c0_i32 = arith.constant 0 : i32
    %c0_i32_0 = arith.constant 0 : i32
    return %arg0, %c0_i32 : i32, i32
  }
  func.func @transform_1(%arg0: i32) -> (i32, i32) {
    %c0_i32 = arith.constant 0 : i32
    %c0_i32_0 = arith.constant 0 : i32
    return %arg0, %c0_i32 : i32, i32
  }
  func.func @transform_2(%arg0: i32) -> (i32, i32) {
    %c0_i32 = arith.constant 0 : i32
    %c0_i32_0 = arith.constant 0 : i32
    %c0_i32_1 = arith.constant 0 : i32
    return %c0_i32, %c0_i32_0 : i32, i32
  }
  func.func @transform_3(%arg0: i32) -> (i32, i32) {
    %c0_i32 = arith.constant 0 : i32
    %c0_i32_0 = arith.constant 0 : i32
    %c0_i32_1 = arith.constant 0 : i32
    return %c0_i32, %c0_i32_0 : i32, i32
  }
  func.func @transform_4(%arg0: i32) -> (i32, i32) {
    %c0_i32 = arith.constant 0 : i32
    %c0_i32_0 = arith.constant 0 : i32
    return %arg0, %c0_i32 : i32, i32
  }
}

</mosaic_0001>

<bundles_post_ra>
// kernel: sematic_embed_block.2
= control target key start
LH: loop header
LB: loop body
LE: loop exit
PB: predicated region body
PF: predicated region fallthrough
CT: control target
= control target key end

     0   :  { %s642_s12 = smov 0   ;;  %s703_s0 = inlined_call_operand.vmem [shape: bf16[512,128], index: 0, kind: input, shape index: {}]   ;;  %s704_s1 = inlined_call_operand.vmem [shape: bf16[128,128], index: 1, kind: input, shape index: {}]   ;;  %s705_s2 = inlined_call_operand.vmem [shape: f32[1,128], index: 2, kind: input, shape index: {}]   ;;  %s706_s3 = inlined_call_operand.vmem [shape: bf16[512,128], index: 3, kind: output, shape index: {}]  }
   0x1 LB: > { %s443_s13 = sadd.s32 4294967295, %s620_s12   ;;  %p447_p0 = scmp.ge.s32.totalorder %s620_s12, 1  ;;  %s620_s12 = sphi %s642_s12, %s13_s12  }
   0x2   : > { %p138_p1 = scmp.lt.s32.totalorder %s620_s12, 5 }
   0x4   : > { %p139_p2 = pnand %p447_p0, %p138_p1 }
   0x5   : > { %s448_s22 = sshll.u32 (!%p139_p2), %s443_s13, 4 }
   0x6   : > { %142 = sbr.rel (%p139_p2) target bundleno = 206 (0xce), region = 32  ;;  %p163_p3 = scmp.lt.s32.totalorder (!%p139_p2), %s448_s22, 63 }
   0xb   : > { %v533_v0 = vld [vmem:[%s704_s1 + $0x38] sm:$0xff]  ;;  %v532_v1 = vld [vmem:[%s704_s1 + $0x30] sm:$0xff]  ;;  %v531_v2 = vld [vmem:[%s704_s1 + $0x28] sm:$0xff]  ;;  %s708_s22 = smov (!%p163_p3, %s448_s22), 63 }
   0xc   : > { %306 = vmatpush.bf16.msra.mxu0 %v533_v0  ;;  %581 = vmatpush.bf16.msra.mxu1 %v533_v0  ;;  %v530_v3 = vld [vmem:[%s704_s1 + $0x20] sm:$0xff]  ;;  %v529_v4 = vld [vmem:[%s704_s1 + $0x18] sm:$0xff]  ;;  %v528_v5 = vld [vmem:[%s704_s1 + $0x10] sm:$0xff]  ;;  %s449_s29 = sshll.u32 %s708_s22, 2 }
   0xd   : > { %582 = vmatpush.bf16.msra.mxu2 %v533_v0  ;;  %583 = vmatpush.bf16.msra.mxu3 %v533_v0  ;;  %v527_v6 = vld [vmem:[%s704_s1 + $0x8] sm:$0xff]  ;;  %v526_v7 = vld [vmem:[%s704_s1] sm:$0xff]  ;;  %s166_s7 = scalar_lea.vmem %s703_s0, %s449_s29  ;;  %s690_s13 = scalar_lea.vmem %s706_s3, %s449_s29 }
   0xe   : > { %v518_v8 = vld [vmem:[%s166_s7] sm:$0xff]  ;;  %v520_v9 = vld [vmem:[%s166_s7 + $0x10] sm:$0xff]  ;;  %v519_v12 = vld [vmem:[%s166_s7 + $0x8] sm:$0xff] }
   0xf   : > { %v522_v10 = vld [vmem:[%s166_s7 + $0x20] sm:$0xff]  ;;  %v524_v11 = vld [vmem:[%s166_s7 + $0x30] sm:$0xff]  ;;  %v521_v13 = vld [vmem:[%s166_s7 + $0x18] sm:$0xff] }
  0x10   : > { %307 = vmatpush.bf16.msra.mxu0 %v532_v1  ;;  %584 = vmatpush.bf16.msra.mxu1 %v532_v1  ;;  %v523_v14 = vld [vmem:[%s166_s7 + $0x28] sm:$0xff]  ;;  %v525_v15 = vld [vmem:[%s166_s7 + $0x38] sm:$0xff]  ;;  %v613_v18 = vld [vmem:[%s705_s2] ss:$0 sm:$0xff] }
  0x11   : > { %585 = vmatpush.bf16.msra.mxu2 %v532_v1  ;;  %586 = vmatpush.bf16.msra.mxu3 %v532_v1 }
  0x14   : > { %308 = vmatpush.bf16.msra.mxu0 %v531_v2  ;;  %587 = vmatpush.bf16.msra.mxu1 %v531_v2 }
  0x15   : > { %588 = vmatpush.bf16.msra.mxu2 %v531_v2  ;;  %589 = vmatpush.bf16.msra.mxu3 %v531_v2 }
  0x18   : > { %309 = vmatpush.bf16.msra.mxu0 %v530_v3  ;;  %590 = vmatpush.bf16.msra.mxu1 %v530_v3 }
  0x19   : > { %591 = vmatpush.bf16.msra.mxu2 %v530_v3  ;;  %592 = vmatpush.bf16.msra.mxu3 %v530_v3 }
  0x1c   : > { %310 = vmatpush.bf16.msra.mxu0 %v529_v4  ;;  %593 = vmatpush.bf16.msra.mxu1 %v529_v4 }
  0x1d   : > { %594 = vmatpush.bf16.msra.mxu2 %v529_v4  ;;  %595 = vmatpush.bf16.msra.mxu3 %v529_v4 }
  0x20   : > { %311 = vmatpush.bf16.msra.mxu0 %v528_v5  ;;  %596 = vmatpush.bf16.msra.mxu1 %v528_v5 }
  0x21   : > { %597 = vmatpush.bf16.msra.mxu2 %v528_v5  ;;  %598 = vmatpush.bf16.msra.mxu3 %v528_v5 }
  0x24   : > { %312 = vmatpush.bf16.msra.mxu0 %v527_v6  ;;  %599 = vmatpush.bf16.msra.mxu1 %v527_v6 }
  0x25   : > { %600 = vmatpush.bf16.msra.mxu2 %v527_v6  ;;  %601 = vmatpush.bf16.msra.mxu3 %v527_v6 }
  0x28   : > { %313 = vmatpush.bf16.msra.mxu0 %v526_v7  ;;  %602 = vmatpush.bf16.msra.mxu1 %v526_v7 }
  0x29   : > { %603 = vmatpush.bf16.msra.mxu2 %v526_v7  ;;  %604 = vmatpush.bf16.msra.mxu3 %v526_v7 }
  0x2b   : > { %314 = vmatmul.bf16.vlgmr.msra.gmra.mxu0 %v518_v8  ;;  %324 = vmatmul.bf16.vlgmr.msra.gmra.mxu1 %v520_v9 }
  0x2c   : > { %334 = vmatmul.bf16.vlgmr.msra.gmra.mxu2 %v522_v10  ;;  %344 = vmatmul.bf16.vlgmr.msra.gmra.mxu3 %v524_v11 }
  0x3b   : > { %319 = vmatmul.bf16.gmra.mxu0 %v519_v12  ;;  %329 = vmatmul.bf16.gmra.mxu1 %v521_v13 }
  0x3c   : > { %339 = vmatmul.bf16.gmra.mxu2 %v523_v14  ;;  %349 = vmatmul.bf16.gmra.mxu3 %v525_v15 }
  0xa8   : > { %v315_v16 = vpop.f32.mrf.mxu0  ;;  %v325_v17 = vpop.f32.mrf.mxu1 }
  0xa9   : > { %v316_v23 = vadd.f32 %v613_v18, %v315_v16  ;;  %v326_v24 = vadd.f32 %v613_v18, %v325_v17 }
  0xaf   : > { %v335_v19 = vpop.f32.mrf.mxu2  ;;  %v345_v20 = vpop.f32.mrf.mxu3 }
  0xb0   : > { %v317_v21 = vpop.f32.mrf.mxu0  ;;  %v327_v22 = vpop.f32.mrf.mxu1  ;;  %v336_v31 = vadd.f32 %v613_v18, %v335_v19  ;;  %v346_v32 = vadd.f32 %v613_v18, %v345_v20 }
  0xb1   : > { %v318_v25 = vadd.f32 %v613_v18, %v317_v21  ;;  %v328_v26 = vadd.f32 %v613_v18, %v327_v22 }
  0xb3   : > { %v537_v27 = vpack.c.bf16 %v318_v25, %v316_v23  ;;  %v547_v28 = vpack.c.bf16 %v328_v26, %v326_v24 }
  0xb5   : > { %538 = vst [vmem:[%s690_s13] sm:$0xff] %v537_v27  }
  0xb6   : > { %575 = vst [vmem:[%s690_s13 + $0x10] sm:$0xff] %v547_v28  }
  0xb7   : > { %v337_v29 = vpop.f32.mrf.mxu2  ;;  %v347_v30 = vpop.f32.mrf.mxu3 }
  0xb8   : > { %v338_v33 = vadd.f32 %v613_v18, %v337_v29  ;;  %v348_v34 = vadd.f32 %v613_v18, %v347_v30  ;;  %v320_v35 = vpop.f32.mrf.mxu0  ;;  %v330_v36 = vpop.f32.mrf.mxu1 }
  0xb9   : > { %v321_v43 = vadd.f32 %v613_v18, %v320_v35  ;;  %v331_v44 = vadd.f32 %v613_v18, %v330_v36 }
  0xba   : > { %v557_v37 = vpack.c.bf16 %v338_v33, %v336_v31  ;;  %v567_v38 = vpack.c.bf16 %v348_v34, %v346_v32 }
  0xbc   : > { %577 = vst [vmem:[%s690_s13 + $0x20] sm:$0xff] %v557_v37  }
  0xbd   : > { %579 = vst [vmem:[%s690_s13 + $0x30] sm:$0xff] %v567_v38  }
  0xbf   : > { %v340_v39 = vpop.f32.mrf.mxu2  ;;  %v350_v40 = vpop.f32.mrf.mxu3 }
  0xc0   : > { %v322_v41 = vpop.f32.mrf.mxu0  ;;  %v332_v42 = vpop.f32.mrf.mxu1  ;;  %v341_v51 = vadd.f32 %v613_v18, %v340_v39  ;;  %v351_v52 = vadd.f32 %v613_v18, %v350_v40 }
  0xc1   : > { %v323_v45 = vadd.f32 %v613_v18, %v322_v41  ;;  %v333_v46 = vadd.f32 %v613_v18, %v332_v42 }
  0xc3   : > { %v542_v47 = vpack.c.bf16 %v323_v45, %v321_v43  ;;  %v552_v48 = vpack.c.bf16 %v333_v46, %v331_v44 }
  0xc5   : > { %574 = vst [vmem:[%s690_s13 + $0x8] sm:$0xff] %v542_v47  }
  0xc6   : > { %576 = vst [vmem:[%s690_s13 + $0x18] sm:$0xff] %v552_v48  }
  0xc7   : > { %v342_v49 = vpop.f32.mrf.mxu2  ;;  %v352_v50 = vpop.f32.mrf.mxu3 }
  0xc8   : > { %v343_v53 = vadd.f32 %v613_v18, %v342_v49  ;;  %v353_v54 = vadd.f32 %v613_v18, %v352_v50 }
  0xca   : > { %v562_v55 = vpack.c.bf16 %v343_v53, %v341_v51  ;;  %v572_v56 = vpack.c.bf16 %v353_v54, %v351_v52 }
  0xcc   : > { %578 = vst [vmem:[%s690_s13 + $0x28] sm:$0xff] %v562_v55  }
  0xcd   : > { %580 = vst [vmem:[%s690_s13 + $0x38] sm:$0xff] %v572_v56  }
  0xce PF: > { %s13_s12 = sadd.s32 1, %s620_s12  }
  0xcf   : > { %p10_p4 = scmp.ge.s32.totalorder %s13_s12, 6  }
  0xd1   :  { %12 = sbr.rel (!%p10_p4) target bundleno = 1 (0x1), region = 62 }

// kernel: sematic_embed_block.3
= control target key start
LH: loop header
LB: loop body
LE: loop exit
PB: predicated region body
PF: predicated region fallthrough
CT: control target
= control target key end

     0   :  { %s1478_s15 = smov 0   ;;  %s1733_s0 = inlined_call_operand.vmem [shape: bf16[2048,128], index: 0, kind: input, shape index: {}]   ;;  %s1734_s1 = inlined_call_operand.vmem [shape: bf16[2048,128], index: 1, kind: input, shape index: {}]   ;;  %s1735_s2 = inlined_call_operand.vmem [shape: bf16[128,128], index: 2, kind: input, shape index: {}]   ;;  %s1736_s3 = inlined_call_operand.vmem [shape: f32[1,128], index: 3, kind: input, shape index: {}]   ;;  %s1737_s4 = inlined_call_operand.vmem [shape: f32[2048,128], index: 4, kind: output, shape index: {}]  }
   0x1 LB: > { %s1040_s16 = sadd.s32 4294967295, %s1451_s15   ;;  %p1044_p0 = scmp.ge.s32.totalorder %s1451_s15, 1  ;;  %s1451_s15 = sphi %s1478_s15, %s14_s15  }
   0x2   : > { %p174_p1 = scmp.lt.s32.totalorder %s1451_s15, 5 }
   0x4   : > { %p175_p2 = pnand %p1044_p0, %p174_p1 }
   0x5   : > { %s1045_s25 = sshll.u32 (!%p175_p2), %s1040_s16, 6 }
   0x6   : > { %178 = sbr.rel (%p175_p2) target bundleno = 302 (0x12e), region = 36  ;;  %p206_p3 = scmp.lt.s32.totalorder (!%p175_p2), %s1045_s25, 255 }
   0xb   : > { %v1252_v0 = vld [vmem:[%s1735_s2 + $0x38] sm:$0xff]  ;;  %v1251_v1 = vld [vmem:[%s1735_s2 + $0x30] sm:$0xff]  ;;  %v1250_v2 = vld [vmem:[%s1735_s2 + $0x28] sm:$0xff]  ;;  %s1739_s25 = smov (!%p206_p3, %s1045_s25), 255 }
   0xc   : > { %547 = vmatpush.bf16.msra.mxu0 %v1252_v0  ;;  %1412 = vmatpush.bf16.msra.mxu1 %v1252_v0  ;;  %v1249_v3 = vld [vmem:[%s1735_s2 + $0x20] sm:$0xff]  ;;  %v1248_v4 = vld [vmem:[%s1735_s2 + $0x18] sm:$0xff]  ;;  %v1247_v5 = vld [vmem:[%s1735_s2 + $0x10] sm:$0xff]  ;;  %s1046_s6 = sshll.u32 %s1739_s25, 2  ;;  %s1050_s18 = sshll.u32 %s1739_s25, 3 }
   0xd   : > { %1413 = vmatpush.bf16.msra.mxu2 %v1252_v0  ;;  %1414 = vmatpush.bf16.msra.mxu3 %v1252_v0  ;;  %v1246_v6 = vld [vmem:[%s1735_s2 + $0x8] sm:$0xff]  ;;  %v1245_v7 = vld [vmem:[%s1735_s2] sm:$0xff]  ;;  %s1518_s11 = scalar_lea.vmem %s1734_s1, %s1046_s6  ;;  %s1557_s14 = scalar_lea.vmem %s1733_s0, %s1046_s6 }
   0xe   : > { %v1213_v8 = vld [vmem:[%s1518_s11] sm:$0xff]  ;;  %v1214_v12 = vld [vmem:[%s1518_s11 + $0x8] sm:$0xff]  ;;  %v1215_v16 = vld [vmem:[%s1518_s11 + $0x10] sm:$0xff]  ;;  %s1572_s21 = scalar_lea.vmem %s1737_s4, %s1050_s18 }
   0xf   : > { %v1221_v9 = vld [vmem:[%s1518_s11 + $0x40] sm:$0xff]  ;;  %v1222_v13 = vld [vmem:[%s1518_s11 + $0x48] sm:$0xff]  ;;  %v1223_v17 = vld [vmem:[%s1518_s11 + $0x50] sm:$0xff] }
  0x10   : > { %548 = vmatpush.bf16.msra.mxu0 %v1251_v1  ;;  %1415 = vmatpush.bf16.msra.mxu1 %v1251_v1  ;;  %v1229_v10 = vld [vmem:[%s1518_s11 + $0x80] sm:$0xff]  ;;  %v1230_v14 = vld [vmem:[%s1518_s11 + $0x88] sm:$0xff]  ;;  %v1231_v18 = vld [vmem:[%s1518_s11 + $0x90] sm:$0xff] }
  0x11   : > { %1416 = vmatpush.bf16.msra.mxu2 %v1251_v1  ;;  %1417 = vmatpush.bf16.msra.mxu3 %v1251_v1  ;;  %v1237_v11 = vld [vmem:[%s1518_s11 + $0xc0] sm:$0xff]  ;;  %v1238_v15 = vld [vmem:[%s1518_s11 + $0xc8] sm:$0xff]  ;;  %v1239_v19 = vld [vmem:[%s1518_s11 + $0xd0] sm:$0xff] }
  0x12   : > { %v1216_v20 = vld [vmem:[%s1518_s11 + $0x18] sm:$0xff]  ;;  %v1217_v24 = vld [vmem:[%s1518_s11 + $0x20] sm:$0xff]  ;;  %v1218_v28 = vld [vmem:[%s1518_s11 + $0x28] sm:$0xff] }
  0x13   : > { %v1224_v21 = vld [vmem:[%s1518_s11 + $0x58] sm:$0xff]  ;;  %v1225_v25 = vld [vmem:[%s1518_s11 + $0x60] sm:$0xff]  ;;  %v1226_v29 = vld [vmem:[%s1518_s11 + $0x68] sm:$0xff] }
  0x14   : > { %549 = vmatpush.bf16.msra.mxu0 %v1250_v2  ;;  %1418 = vmatpush.bf16.msra.mxu1 %v1250_v2  ;;  %v1232_v22 = vld [vmem:[%s1518_s11 + $0x98] sm:$0xff]  ;;  %v1233_v26 = vld [vmem:[%s1518_s11 + $0xa0] sm:$0xff]  ;;  %v1234_v30 = vld [vmem:[%s1518_s11 + $0xa8] sm:$0xff] }
  0x15   : > { %1419 = vmatpush.bf16.msra.mxu2 %v1250_v2  ;;  %1420 = vmatpush.bf16.msra.mxu3 %v1250_v2  ;;  %v1240_v23 = vld [vmem:[%s1518_s11 + $0xd8] sm:$0xff]  ;;  %v1241_v27 = vld [vmem:[%s1518_s11 + $0xe0] sm:$0xff]  ;;  %v1242_v31 = vld [vmem:[%s1518_s11 + $0xe8] sm:$0xff] }
  0x16   : > { %v1219_v32 = vld [vmem:[%s1518_s11 + $0x30] sm:$0xff]  ;;  %v1220_v36 = vld [vmem:[%s1518_s11 + $0x38] sm:$0xff]  ;;  %v1254_v40 = vld [vmem:[%s1557_s14] sm:$0xff]  }
  0x17   : > { %v1227_v33 = vld [vmem:[%s1518_s11 + $0x70] sm:$0xff]  ;;  %v1228_v37 = vld [vmem:[%s1518_s11 + $0x78] sm:$0xff]  ;;  %v1388_v41 = vld [vmem:[%s1557_s14 + $0x40] sm:$0xff]   ;;  %v1255_v43 = vunpack.c.l.bf16 %v1254_v40  ;;  %v1256_v57 = vunpack.c.h.bf16 %v1254_v40 }
  0x18   : > { %550 = vmatpush.bf16.msra.mxu0 %v1249_v3  ;;  %1421 = vmatpush.bf16.msra.mxu1 %v1249_v3  ;;  %v1235_v34 = vld [vmem:[%s1518_s11 + $0xb0] sm:$0xff]  ;;  %v1236_v38 = vld [vmem:[%s1518_s11 + $0xb8] sm:$0xff]  ;;  %v1564_v42 = vld [vmem:[%s1736_s3] ss:$0 sm:$0xff]  ;;  %v1287_v44 = vunpack.c.l.bf16 %v1388_v41  ;;  %v1288_v58 = vunpack.c.h.bf16 %v1388_v41 }
  0x19   : > { %1422 = vmatpush.bf16.msra.mxu2 %v1249_v3  ;;  %1423 = vmatpush.bf16.msra.mxu3 %v1249_v3  ;;  %v1243_v35 = vld [vmem:[%s1518_s11 + $0xf0] sm:$0xff]  ;;  %v1244_v39 = vld [vmem:[%s1518_s11 + $0xf8] sm:$0xff]  ;;  %v1396_v51 = vld [vmem:[%s1557_s14 + $0x80] sm:$0xff]  }
  0x1a   : > { %v1404_v52 = vld [vmem:[%s1557_s14 + $0xc0] sm:$0xff]   ;;  %v1319_v53 = vunpack.c.l.bf16 %v1396_v51  ;;  %v1382_v41 = vld [vmem:[%s1557_s14 + $0x10] sm:$0xff]  }
  0x1b   : > { %v1351_v54 = vunpack.c.l.bf16 %v1404_v52 }
  0x1c   : > { %551 = vmatpush.bf16.msra.mxu0 %v1248_v4  ;;  %1424 = vmatpush.bf16.msra.mxu1 %v1248_v4 }
  0x1d   : > { %1425 = vmatpush.bf16.msra.mxu2 %v1248_v4  ;;  %1426 = vmatpush.bf16.msra.mxu3 %v1248_v4 }
  0x20   : > { %552 = vmatpush.bf16.msra.mxu0 %v1247_v5  ;;  %1427 = vmatpush.bf16.msra.mxu1 %v1247_v5 }
  0x21   : > { %1428 = vmatpush.bf16.msra.mxu2 %v1247_v5  ;;  %1429 = vmatpush.bf16.msra.mxu3 %v1247_v5  ;;  %v1381_v5 = vld [vmem:[%s1557_s14 + $0x8] sm:$0xff]  }
  0x24   : > { %553 = vmatpush.bf16.msra.mxu0 %v1246_v6  ;;  %1430 = vmatpush.bf16.msra.mxu1 %v1246_v6 }
  0x25   : > { %1431 = vmatpush.bf16.msra.mxu2 %v1246_v6  ;;  %1432 = vmatpush.bf16.msra.mxu3 %v1246_v6  ;;  %v1389_v6 = vld [vmem:[%s1557_s14 + $0x48] sm:$0xff]  }
  0x28   : > { %554 = vmatpush.bf16.msra.mxu0 %v1245_v7  ;;  %1433 = vmatpush.bf16.msra.mxu1 %v1245_v7 }
  0x29   : > { %1434 = vmatpush.bf16.msra.mxu2 %v1245_v7  ;;  %1435 = vmatpush.bf16.msra.mxu3 %v1245_v7  ;;  %v1320_v7 = vunpack.c.h.bf16 %v1396_v51 }
  0x2b   : > { %555 = vmatmul.bf16.vlgmr.msra.gmra.mxu0 %v1213_v8  ;;  %595 = vmatmul.bf16.vlgmr.msra.gmra.mxu1 %v1221_v9  ;;  %v1352_v8 = vunpack.c.h.bf16 %v1404_v52 }
  0x2c   : > { %635 = vmatmul.bf16.vlgmr.msra.gmra.mxu2 %v1229_v10  ;;  %675 = vmatmul.bf16.vlgmr.msra.gmra.mxu3 %v1237_v11  ;;  %v1259_v11 = vunpack.c.l.bf16 %v1381_v5 }
  0x3b   : > { %560 = vmatmul.bf16.gmra.mxu0 %v1214_v12  ;;  %600 = vmatmul.bf16.gmra.mxu1 %v1222_v13  ;;  %v1291_v12 = vunpack.c.l.bf16 %v1389_v6 }
  0x3c   : > { %640 = vmatmul.bf16.gmra.mxu2 %v1230_v14  ;;  %680 = vmatmul.bf16.gmra.mxu3 %v1238_v15 }
  0x4b   : > { %565 = vmatmul.bf16.gmra.mxu0 %v1215_v16  ;;  %605 = vmatmul.bf16.gmra.mxu1 %v1223_v17 }
  0x4c   : > { %645 = vmatmul.bf16.gmra.mxu2 %v1231_v18  ;;  %685 = vmatmul.bf16.gmra.mxu3 %v1239_v19 }
  0x5b   : > { %570 = vmatmul.bf16.gmra.mxu0 %v1216_v20  ;;  %610 = vmatmul.bf16.gmra.mxu1 %v1224_v21 }
  0x5c   : > { %650 = vmatmul.bf16.gmra.mxu2 %v1232_v22  ;;  %690 = vmatmul.bf16.gmra.mxu3 %v1240_v23  ;;  %v1397_v23 = vld [vmem:[%s1557_s14 + $0x88] sm:$0xff]  }
  0x6b   : > { %575 = vmatmul.bf16.gmra.mxu0 %v1217_v24  ;;  %615 = vmatmul.bf16.gmra.mxu1 %v1225_v25  ;;  %v1405_v24 = vld [vmem:[%s1557_s14 + $0xc8] sm:$0xff]   ;;  %v1323_v25 = vunpack.c.l.bf16 %v1397_v23 }
  0x6c   : > { %655 = vmatmul.bf16.gmra.mxu2 %v1233_v26  ;;  %695 = vmatmul.bf16.gmra.mxu3 %v1241_v27  ;;  %v1355_v26 = vunpack.c.l.bf16 %v1405_v24 }
  0x7b   : > { %580 = vmatmul.bf16.gmra.mxu0 %v1218_v28  ;;  %620 = vmatmul.bf16.gmra.mxu1 %v1226_v29  ;;  %v1260_v29 = vunpack.c.h.bf16 %v1381_v5 }
  0x7c   : > { %660 = vmatmul.bf16.gmra.mxu2 %v1234_v30  ;;  %700 = vmatmul.bf16.gmra.mxu3 %v1242_v31  ;;  %v1292_v30 = vunpack.c.h.bf16 %v1389_v6 }
  0x8b   : > { %585 = vmatmul.bf16.gmra.mxu0 %v1219_v32  ;;  %625 = vmatmul.bf16.gmra.mxu1 %v1227_v33 }
  0x8c   : > { %665 = vmatmul.bf16.gmra.mxu2 %v1235_v34  ;;  %705 = vmatmul.bf16.gmra.mxu3 %v1243_v35 }
  0x9b   : > { %590 = vmatmul.bf16.gmra.mxu0 %v1220_v36  ;;  %630 = vmatmul.bf16.gmra.mxu1 %v1228_v37 }
  0x9c   : > { %670 = vmatmul.bf16.gmra.mxu2 %v1236_v38  ;;  %710 = vmatmul.bf16.gmra.mxu3 %v1244_v39 }
  0xa8   : > { %v556_v45 = vpop.f32.mrf.mxu0  ;;  %v596_v46 = vpop.f32.mrf.mxu1 }
  0xa9   : > { %v557_v47 = vadd.f32 %v1564_v42, %v556_v45  ;;  %v597_v48 = vadd.f32 %v1564_v42, %v596_v46  ;;  %v1356_v45 = vunpack.c.h.bf16 %v1405_v24 }
  0xab   : > { %v844_v49 = vmul.f32 %v1255_v43, %v557_v47  ;;  %v860_v50 = vmul.f32 %v1287_v44, %v597_v48  ;;  %v1390_v43 = vld [vmem:[%s1557_s14 + $0x50] sm:$0xff]   ;;  %v1324_v44 = vunpack.c.h.bf16 %v1397_v23  ;;  %v1263_v48 = vunpack.c.l.bf16 %v1382_v41 }
  0xad   : > { %908 = vst [vmem:[%s1572_s21] sm:$0xff] %v844_v49  ;;  %v1295_v49 = vunpack.c.l.bf16 %v1390_v43 }
  0xae   : > { %924 = vst [vmem:[%s1572_s21 + $0x80] sm:$0xff] %v860_v50 }
  0xaf   : > { %v636_v55 = vpop.f32.mrf.mxu2  ;;  %v676_v56 = vpop.f32.mrf.mxu3 }
  0xb0   : > { %v637_v59 = vadd.f32 %v1564_v42, %v636_v55  ;;  %v677_v60 = vadd.f32 %v1564_v42, %v676_v56  ;;  %v558_v61 = vpop.f32.mrf.mxu0  ;;  %v598_v62 = vpop.f32.mrf.mxu1 }
  0xb1   : > { %v559_v63 = vadd.f32 %v1564_v42, %v558_v61  ;;  %v599_v0 = vadd.f32 %v1564_v42, %v598_v62  ;;  %v1406_v61 = vld [vmem:[%s1557_s14 + $0xd0] sm:$0xff]  }
  0xb2   : > { %v876_v1 = vmul.f32 %v1319_v53, %v637_v59  ;;  %v892_v2 = vmul.f32 %v1351_v54, %v677_v60  ;;  %v1398_v60 = vld [vmem:[%s1557_s14 + $0x90] sm:$0xff]  }
  0xb3   : > { %v845_v3 = vmul.f32 %v1256_v57, %v559_v63  ;;  %v861_v4 = vmul.f32 %v1288_v58, %v599_v0  ;;  %v1327_v62 = vunpack.c.l.bf16 %v1398_v60  ;;  %v1359_v63 = vunpack.c.l.bf16 %v1406_v61 }
  0xb4   : > { %940 = vst [vmem:[%s1572_s21 + $0x100] sm:$0xff] %v876_v1 }
  0xb5   : > { %956 = vst [vmem:[%s1572_s21 + $0x180] sm:$0xff] %v892_v2  ;;  %v1264_v2 = vunpack.c.h.bf16 %v1382_v41 }
  0xb6   : > { %909 = vst [vmem:[%s1572_s21 + $0x8] sm:$0xff] %v845_v3  ;;  %v1296_v3 = vunpack.c.h.bf16 %v1390_v43 }
  0xb7   : > { %925 = vst [vmem:[%s1572_s21 + $0x88] sm:$0xff] %v861_v4  ;;  %v638_v9 = vpop.f32.mrf.mxu2  ;;  %v678_v10 = vpop.f32.mrf.mxu3 }
  0xb8   : > { %v639_v13 = vadd.f32 %v1564_v42, %v638_v9  ;;  %v679_v14 = vadd.f32 %v1564_v42, %v678_v10  ;;  %v561_v15 = vpop.f32.mrf.mxu0  ;;  %v601_v16 = vpop.f32.mrf.mxu1 }
  0xb9   : > { %v562_v17 = vadd.f32 %v1564_v42, %v561_v15  ;;  %v602_v18 = vadd.f32 %v1564_v42, %v601_v16  ;;  %v1391_v15 = vld [vmem:[%s1557_s14 + $0x58] sm:$0xff]   ;;  %v1328_v16 = vunpack.c.h.bf16 %v1398_v60 }
  0xba   : > { %v877_v19 = vmul.f32 %v1320_v7, %v639_v13  ;;  %v893_v20 = vmul.f32 %v1352_v8, %v679_v14  ;;  %v1383_v14 = vld [vmem:[%s1557_s14 + $0x18] sm:$0xff]  }
  0xbb   : > { %v846_v21 = vmul.f32 %v1259_v11, %v562_v17  ;;  %v862_v22 = vmul.f32 %v1291_v12, %v602_v18  ;;  %v1360_v17 = vunpack.c.h.bf16 %v1406_v61 }
  0xbc   : > { %941 = vst [vmem:[%s1572_s21 + $0x108] sm:$0xff] %v877_v19 }
  0xbd   : > { %957 = vst [vmem:[%s1572_s21 + $0x188] sm:$0xff] %v893_v20  ;;  %v1267_v20 = vunpack.c.l.bf16 %v1383_v14 }
  0xbe   : > { %910 = vst [vmem:[%s1572_s21 + $0x10] sm:$0xff] %v846_v21  ;;  %v1299_v21 = vunpack.c.l.bf16 %v1391_v15 }
  0xbf   : > { %926 = vst [vmem:[%s1572_s21 + $0x90] sm:$0xff] %v862_v22  ;;  %v641_v27 = vpop.f32.mrf.mxu2  ;;  %v681_v28 = vpop.f32.mrf.mxu3 }
  0xc0   : > { %v642_v31 = vadd.f32 %v1564_v42, %v641_v27  ;;  %v682_v32 = vadd.f32 %v1564_v42, %v681_v28  ;;  %v563_v33 = vpop.f32.mrf.mxu0  ;;  %v603_v34 = vpop.f32.mrf.mxu1 }
  0xc1   : > { %v564_v35 = vadd.f32 %v1564_v42, %v563_v33  ;;  %v604_v36 = vadd.f32 %v1564_v42, %v603_v34  ;;  %v1407_v33 = vld [vmem:[%s1557_s14 + $0xd8] sm:$0xff]  }
  0xc2   : > { %v878_v37 = vmul.f32 %v1323_v25, %v642_v31  ;;  %v894_v38 = vmul.f32 %v1355_v26, %v682_v32  ;;  %v1399_v32 = vld [vmem:[%s1557_s14 + $0x98] sm:$0xff]  }
  0xc3   : > { %v847_v39 = vmul.f32 %v1260_v29, %v564_v35  ;;  %v863_v40 = vmul.f32 %v1292_v30, %v604_v36  ;;  %v1331_v34 = vunpack.c.l.bf16 %v1399_v32  ;;  %v1363_v35 = vunpack.c.l.bf16 %v1407_v33 }
  0xc4   : > { %942 = vst [vmem:[%s1572_s21 + $0x110] sm:$0xff] %v878_v37 }
  0xc5   : > { %958 = vst [vmem:[%s1572_s21 + $0x190] sm:$0xff] %v894_v38  ;;  %v1268_v38 = vunpack.c.h.bf16 %v1383_v14 }
  0xc6   : > { %911 = vst [vmem:[%s1572_s21 + $0x18] sm:$0xff] %v847_v39  ;;  %v1300_v39 = vunpack.c.h.bf16 %v1391_v15 }
  0xc7   : > { %927 = vst [vmem:[%s1572_s21 + $0x98] sm:$0xff] %v863_v40  ;;  %v643_v46 = vpop.f32.mrf.mxu2  ;;  %v683_v47 = vpop.f32.mrf.mxu3 }
  0xc8   : > { %v644_v50 = vadd.f32 %v1564_v42, %v643_v46  ;;  %v684_v51 = vadd.f32 %v1564_v42, %v683_v47  ;;  %v566_v52 = vpop.f32.mrf.mxu0  ;;  %v606_v53 = vpop.f32.mrf.mxu1 }
  0xc9   : > { %v567_v54 = vadd.f32 %v1564_v42, %v566_v52  ;;  %v607_v55 = vadd.f32 %v1564_v42, %v606_v53  ;;  %v1392_v52 = vld [vmem:[%s1557_s14 + $0x60] sm:$0xff]   ;;  %v1332_v53 = vunpack.c.h.bf16 %v1399_v32 }
  0xca   : > { %v879_v56 = vmul.f32 %v1324_v44, %v644_v50  ;;  %v895_v57 = vmul.f32 %v1356_v45, %v684_v51  ;;  %v1384_v51 = vld [vmem:[%s1557_s14 + $0x20] sm:$0xff]  }
  0xcb   : > { %v848_v58 = vmul.f32 %v1263_v48, %v567_v54  ;;  %v864_v59 = vmul.f32 %v1295_v49, %v607_v55  ;;  %v1364_v54 = vunpack.c.h.bf16 %v1407_v33 }
  0xcc   : > { %943 = vst [vmem:[%s1572_s21 + $0x118] sm:$0xff] %v879_v56 }
  0xcd   : > { %959 = vst [vmem:[%s1572_s21 + $0x198] sm:$0xff] %v895_v57  ;;  %v1271_v57 = vunpack.c.l.bf16 %v1384_v51 }
  0xce   : > { %912 = vst [vmem:[%s1572_s21 + $0x20] sm:$0xff] %v848_v58  ;;  %v1303_v58 = vunpack.c.l.bf16 %v1392_v52 }
  0xcf   : > { %928 = vst [vmem:[%s1572_s21 + $0xa0] sm:$0xff] %v864_v59  ;;  %v646_v0 = vpop.f32.mrf.mxu2  ;;  %v686_v1 = vpop.f32.mrf.mxu3 }
  0xd0   : > { %v647_v4 = vadd.f32 %v1564_v42, %v646_v0  ;;  %v687_v5 = vadd.f32 %v1564_v42, %v686_v1  ;;  %v568_v6 = vpop.f32.mrf.mxu0  ;;  %v608_v7 = vpop.f32.mrf.mxu1 }
  0xd1   : > { %v569_v8 = vadd.f32 %v1564_v42, %v568_v6  ;;  %v609_v9 = vadd.f32 %v1564_v42, %v608_v7  ;;  %v1408_v6 = vld [vmem:[%s1557_s14 + $0xe0] sm:$0xff]  }
  0xd2   : > { %v880_v10 = vmul.f32 %v1327_v62, %v647_v4  ;;  %v896_v11 = vmul.f32 %v1359_v63, %v687_v5  ;;  %v1400_v5 = vld [vmem:[%s1557_s14 + $0xa0] sm:$0xff]  }
  0xd3   : > { %v849_v12 = vmul.f32 %v1264_v2, %v569_v8  ;;  %v865_v13 = vmul.f32 %v1296_v3, %v609_v9  ;;  %v1335_v7 = vunpack.c.l.bf16 %v1400_v5  ;;  %v1367_v8 = vunpack.c.l.bf16 %v1408_v6 }
  0xd4   : > { %944 = vst [vmem:[%s1572_s21 + $0x120] sm:$0xff] %v880_v10 }
  0xd5   : > { %960 = vst [vmem:[%s1572_s21 + $0x1a0] sm:$0xff] %v896_v11  ;;  %v1272_v11 = vunpack.c.h.bf16 %v1384_v51 }
  0xd6   : > { %913 = vst [vmem:[%s1572_s21 + $0x28] sm:$0xff] %v849_v12  ;;  %v1304_v12 = vunpack.c.h.bf16 %v1392_v52 }
  0xd7   : > { %929 = vst [vmem:[%s1572_s21 + $0xa8] sm:$0xff] %v865_v13  ;;  %v648_v18 = vpop.f32.mrf.mxu2  ;;  %v688_v19 = vpop.f32.mrf.mxu3 }
  0xd8   : > { %v649_v22 = vadd.f32 %v1564_v42, %v648_v18  ;;  %v689_v23 = vadd.f32 %v1564_v42, %v688_v19  ;;  %v571_v24 = vpop.f32.mrf.mxu0  ;;  %v611_v25 = vpop.f32.mrf.mxu1 }
  0xd9   : > { %v572_v26 = vadd.f32 %v1564_v42, %v571_v24  ;;  %v612_v27 = vadd.f32 %v1564_v42, %v611_v25  ;;  %v1393_v24 = vld [vmem:[%s1557_s14 + $0x68] sm:$0xff]   ;;  %v1336_v25 = vunpack.c.h.bf16 %v1400_v5 }
  0xda   : > { %v881_v28 = vmul.f32 %v1328_v16, %v649_v22  ;;  %v897_v29 = vmul.f32 %v1360_v17, %v689_v23  ;;  %v1385_v23 = vld [vmem:[%s1557_s14 + $0x28] sm:$0xff]  }
  0xdb   : > { %v850_v30 = vmul.f32 %v1267_v20, %v572_v26  ;;  %v866_v31 = vmul.f32 %v1299_v21, %v612_v27  ;;  %v1368_v26 = vunpack.c.h.bf16 %v1408_v6 }
  0xdc   : > { %945 = vst [vmem:[%s1572_s21 + $0x128] sm:$0xff] %v881_v28 }
  0xdd   : > { %961 = vst [vmem:[%s1572_s21 + $0x1a8] sm:$0xff] %v897_v29  ;;  %v1275_v29 = vunpack.c.l.bf16 %v1385_v23 }
  0xde   : > { %914 = vst [vmem:[%s1572_s21 + $0x30] sm:$0xff] %v850_v30  ;;  %v1307_v30 = vunpack.c.l.bf16 %v1393_v24 }
  0xdf   : > { %930 = vst [vmem:[%s1572_s21 + $0xb0] sm:$0xff] %v866_v31  ;;  %v651_v36 = vpop.f32.mrf.mxu2  ;;  %v691_v37 = vpop.f32.mrf.mxu3 }
  0xe0   : > { %v652_v40 = vadd.f32 %v1564_v42, %v651_v36  ;;  %v692_v41 = vadd.f32 %v1564_v42, %v691_v37  ;;  %v573_v43 = vpop.f32.mrf.mxu0  ;;  %v613_v44 = vpop.f32.mrf.mxu1 }
  0xe1   : > { %v574_v45 = vadd.f32 %v1564_v42, %v573_v43  ;;  %v614_v46 = vadd.f32 %v1564_v42, %v613_v44  ;;  %v1409_v43 = vld [vmem:[%s1557_s14 + $0xe8] sm:$0xff]  }
  0xe2   : > { %v882_v47 = vmul.f32 %v1331_v34, %v652_v40  ;;  %v898_v48 = vmul.f32 %v1363_v35, %v692_v41  ;;  %v1401_v41 = vld [vmem:[%s1557_s14 + $0xa8] sm:$0xff]  }
  0xe3   : > { %v851_v49 = vmul.f32 %v1268_v38, %v574_v45  ;;  %v867_v50 = vmul.f32 %v1300_v39, %v614_v46  ;;  %v1339_v44 = vunpack.c.l.bf16 %v1401_v41  ;;  %v1371_v45 = vunpack.c.l.bf16 %v1409_v43 }
  0xe4   : > { %946 = vst [vmem:[%s1572_s21 + $0x130] sm:$0xff] %v882_v47 }
  0xe5   : > { %962 = vst [vmem:[%s1572_s21 + $0x1b0] sm:$0xff] %v898_v48  ;;  %v1276_v48 = vunpack.c.h.bf16 %v1385_v23 }
  0xe6   : > { %915 = vst [vmem:[%s1572_s21 + $0x38] sm:$0xff] %v851_v49  ;;  %v1308_v49 = vunpack.c.h.bf16 %v1393_v24 }
  0xe7   : > { %931 = vst [vmem:[%s1572_s21 + $0xb8] sm:$0xff] %v867_v50  ;;  %v653_v55 = vpop.f32.mrf.mxu2  ;;  %v693_v56 = vpop.f32.mrf.mxu3 }
  0xe8   : > { %v654_v59 = vadd.f32 %v1564_v42, %v653_v55  ;;  %v694_v60 = vadd.f32 %v1564_v42, %v693_v56  ;;  %v576_v61 = vpop.f32.mrf.mxu0  ;;  %v616_v62 = vpop.f32.mrf.mxu1 }
  0xe9   : > { %v577_v63 = vadd.f32 %v1564_v42, %v576_v61  ;;  %v617_v0 = vadd.f32 %v1564_v42, %v616_v62  ;;  %v1394_v61 = vld [vmem:[%s1557_s14 + $0x70] sm:$0xff]   ;;  %v1340_v62 = vunpack.c.h.bf16 %v1401_v41 }
  0xea   : > { %v883_v1 = vmul.f32 %v1332_v53, %v654_v59  ;;  %v899_v2 = vmul.f32 %v1364_v54, %v694_v60  ;;  %v1386_v60 = vld [vmem:[%s1557_s14 + $0x30] sm:$0xff]  }
  0xeb   : > { %v852_v3 = vmul.f32 %v1271_v57, %v577_v63  ;;  %v868_v4 = vmul.f32 %v1303_v58, %v617_v0  ;;  %v1372_v63 = vunpack.c.h.bf16 %v1409_v43 }
  0xec   : > { %947 = vst [vmem:[%s1572_s21 + $0x138] sm:$0xff] %v883_v1 }
  0xed   : > { %963 = vst [vmem:[%s1572_s21 + $0x1b8] sm:$0xff] %v899_v2  ;;  %v1279_v2 = vunpack.c.l.bf16 %v1386_v60 }
  0xee   : > { %916 = vst [vmem:[%s1572_s21 + $0x40] sm:$0xff] %v852_v3  ;;  %v1311_v3 = vunpack.c.l.bf16 %v1394_v61 }
  0xef   : > { %932 = vst [vmem:[%s1572_s21 + $0xc0] sm:$0xff] %v868_v4  ;;  %v656_v9 = vpop.f32.mrf.mxu2  ;;  %v696_v10 = vpop.f32.mrf.mxu3 }
  0xf0   : > { %v657_v13 = vadd.f32 %v1564_v42, %v656_v9  ;;  %v697_v14 = vadd.f32 %v1564_v42, %v696_v10  ;;  %v578_v15 = vpop.f32.mrf.mxu0  ;;  %v618_v16 = vpop.f32.mrf.mxu1 }
  0xf1   : > { %v579_v17 = vadd.f32 %v1564_v42, %v578_v15  ;;  %v619_v18 = vadd.f32 %v1564_v42, %v618_v16  ;;  %v1410_v15 = vld [vmem:[%s1557_s14 + $0xf0] sm:$0xff]  }
  0xf2   : > { %v884_v19 = vmul.f32 %v1335_v7, %v657_v13  ;;  %v900_v20 = vmul.f32 %v1367_v8, %v697_v14  ;;  %v1402_v14 = vld [vmem:[%s1557_s14 + $0xb0] sm:$0xff]  }
  0xf3   : > { %v853_v21 = vmul.f32 %v1272_v11, %v579_v17  ;;  %v869_v22 = vmul.f32 %v1304_v12, %v619_v18  ;;  %v1343_v16 = vunpack.c.l.bf16 %v1402_v14  ;;  %v1375_v17 = vunpack.c.l.bf16 %v1410_v15 }
  0xf4   : > { %948 = vst [vmem:[%s1572_s21 + $0x140] sm:$0xff] %v884_v19 }
  0xf5   : > { %964 = vst [vmem:[%s1572_s21 + $0x1c0] sm:$0xff] %v900_v20  ;;  %v1280_v20 = vunpack.c.h.bf16 %v1386_v60 }
  0xf6   : > { %917 = vst [vmem:[%s1572_s21 + $0x48] sm:$0xff] %v853_v21  ;;  %v1312_v21 = vunpack.c.h.bf16 %v1394_v61 }
  0xf7   : > { %933 = vst [vmem:[%s1572_s21 + $0xc8] sm:$0xff] %v869_v22  ;;  %v658_v27 = vpop.f32.mrf.mxu2  ;;  %v698_v28 = vpop.f32.mrf.mxu3 }
  0xf8   : > { %v659_v31 = vadd.f32 %v1564_v42, %v658_v27  ;;  %v699_v32 = vadd.f32 %v1564_v42, %v698_v28  ;;  %v581_v33 = vpop.f32.mrf.mxu0  ;;  %v621_v34 = vpop.f32.mrf.mxu1 }
  0xf9   : > { %v582_v35 = vadd.f32 %v1564_v42, %v581_v33  ;;  %v622_v36 = vadd.f32 %v1564_v42, %v621_v34  ;;  %v1395_v33 = vld [vmem:[%s1557_s14 + $0x78] sm:$0xff]   ;;  %v1344_v34 = vunpack.c.h.bf16 %v1402_v14 }
  0xfa   : > { %v885_v37 = vmul.f32 %v1336_v25, %v659_v31  ;;  %v901_v38 = vmul.f32 %v1368_v26, %v699_v32  ;;  %v1387_v32 = vld [vmem:[%s1557_s14 + $0x38] sm:$0xff]  }
  0xfb   : > { %v854_v39 = vmul.f32 %v1275_v29, %v582_v35  ;;  %v870_v40 = vmul.f32 %v1307_v30, %v622_v36  ;;  %v1376_v35 = vunpack.c.h.bf16 %v1410_v15 }
  0xfc   : > { %949 = vst [vmem:[%s1572_s21 + $0x148] sm:$0xff] %v885_v37 }
  0xfd   : > { %965 = vst [vmem:[%s1572_s21 + $0x1c8] sm:$0xff] %v901_v38  ;;  %v1283_v38 = vunpack.c.l.bf16 %v1387_v32 }
  0xfe   : > { %918 = vst [vmem:[%s1572_s21 + $0x50] sm:$0xff] %v854_v39  ;;  %v1315_v39 = vunpack.c.l.bf16 %v1395_v33 }
  0xff   : > { %934 = vst [vmem:[%s1572_s21 + $0xd0] sm:$0xff] %v870_v40  ;;  %v661_v46 = vpop.f32.mrf.mxu2  ;;  %v701_v47 = vpop.f32.mrf.mxu3 }
 0x100   : > { %v662_v50 = vadd.f32 %v1564_v42, %v661_v46  ;;  %v702_v51 = vadd.f32 %v1564_v42, %v701_v47  ;;  %v583_v52 = vpop.f32.mrf.mxu0  ;;  %v623_v53 = vpop.f32.mrf.mxu1 }
 0x101   : > { %v584_v54 = vadd.f32 %v1564_v42, %v583_v52  ;;  %v624_v55 = vadd.f32 %v1564_v42, %v623_v53  ;;  %v1411_v52 = vld [vmem:[%s1557_s14 + $0xf8] sm:$0xff]  }
 0x102   : > { %v886_v56 = vmul.f32 %v1339_v44, %v662_v50  ;;  %v902_v57 = vmul.f32 %v1371_v45, %v702_v51  ;;  %v1403_v51 = vld [vmem:[%s1557_s14 + $0xb8] sm:$0xff]  }
 0x103   : > { %v855_v58 = vmul.f32 %v1276_v48, %v584_v54  ;;  %v871_v59 = vmul.f32 %v1308_v49, %v624_v55  ;;  %v1347_v53 = vunpack.c.l.bf16 %v1403_v51  ;;  %v1379_v54 = vunpack.c.l.bf16 %v1411_v52 }
 0x104   : > { %950 = vst [vmem:[%s1572_s21 + $0x150] sm:$0xff] %v886_v56 }
 0x105   : > { %966 = vst [vmem:[%s1572_s21 + $0x1d0] sm:$0xff] %v902_v57  ;;  %v1284_v57 = vunpack.c.h.bf16 %v1387_v32 }
 0x106   : > { %919 = vst [vmem:[%s1572_s21 + $0x58] sm:$0xff] %v855_v58  ;;  %v1316_v58 = vunpack.c.h.bf16 %v1395_v33 }
 0x107   : > { %935 = vst [vmem:[%s1572_s21 + $0xd8] sm:$0xff] %v871_v59  ;;  %v663_v0 = vpop.f32.mrf.mxu2  ;;  %v703_v1 = vpop.f32.mrf.mxu3 }
 0x108   : > { %v664_v4 = vadd.f32 %v1564_v42, %v663_v0  ;;  %v704_v5 = vadd.f32 %v1564_v42, %v703_v1  ;;  %v586_v6 = vpop.f32.mrf.mxu0  ;;  %v626_v7 = vpop.f32.mrf.mxu1 }
 0x109   : > { %v587_v8 = vadd.f32 %v1564_v42, %v586_v6  ;;  %v627_v9 = vadd.f32 %v1564_v42, %v626_v7  ;;  %v1380_v6 = vunpack.c.h.bf16 %v1411_v52 }
 0x10a   : > { %v887_v10 = vmul.f32 %v1340_v62, %v664_v4  ;;  %v903_v11 = vmul.f32 %v1372_v63, %v704_v5  ;;  %v1348_v5 = vunpack.c.h.bf16 %v1403_v51 }
 0x10b   : > { %v856_v12 = vmul.f32 %v1279_v2, %v587_v8  ;;  %v872_v13 = vmul.f32 %v1311_v3, %v627_v9 }
 0x10c   : > { %951 = vst [vmem:[%s1572_s21 + $0x158] sm:$0xff] %v887_v10 }
 0x10d   : > { %967 = vst [vmem:[%s1572_s21 + $0x1d8] sm:$0xff] %v903_v11 }
 0x10e   : > { %920 = vst [vmem:[%s1572_s21 + $0x60] sm:$0xff] %v856_v12 }
 0x10f   : > { %936 = vst [vmem:[%s1572_s21 + $0xe0] sm:$0xff] %v872_v13  ;;  %v666_v18 = vpop.f32.mrf.mxu2  ;;  %v706_v19 = vpop.f32.mrf.mxu3 }
 0x110   : > { %v667_v22 = vadd.f32 %v1564_v42, %v666_v18  ;;  %v707_v23 = vadd.f32 %v1564_v42, %v706_v19  ;;  %v588_v24 = vpop.f32.mrf.mxu0  ;;  %v628_v25 = vpop.f32.mrf.mxu1 }
 0x111   : > { %v589_v26 = vadd.f32 %v1564_v42, %v588_v24  ;;  %v629_v27 = vadd.f32 %v1564_v42, %v628_v25 }
 0x112   : > { %v888_v28 = vmul.f32 %v1343_v16, %v667_v22  ;;  %v904_v29 = vmul.f32 %v1375_v17, %v707_v23 }
 0x113   : > { %v857_v30 = vmul.f32 %v1280_v20, %v589_v26  ;;  %v873_v31 = vmul.f32 %v1312_v21, %v629_v27 }
 0x114   : > { %952 = vst [vmem:[%s1572_s21 + $0x160] sm:$0xff] %v888_v28 }
 0x115   : > { %968 = vst [vmem:[%s1572_s21 + $0x1e0] sm:$0xff] %v904_v29 }
 0x116   : > { %921 = vst [vmem:[%s1572_s21 + $0x68] sm:$0xff] %v857_v30 }
 0x117   : > { %937 = vst [vmem:[%s1572_s21 + $0xe8] sm:$0xff] %v873_v31  ;;  %v668_v36 = vpop.f32.mrf.mxu2  ;;  %v708_v37 = vpop.f32.mrf.mxu3 }
 0x118   : > { %v669_v40 = vadd.f32 %v1564_v42, %v668_v36  ;;  %v709_v41 = vadd.f32 %v1564_v42, %v708_v37  ;;  %v591_v43 = vpop.f32.mrf.mxu0  ;;  %v631_v44 = vpop.f32.mrf.mxu1 }
 0x119   : > { %v592_v45 = vadd.f32 %v1564_v42, %v591_v43  ;;  %v632_v46 = vadd.f32 %v1564_v42, %v631_v44 }
 0x11a   : > { %v889_v47 = vmul.f32 %v1344_v34, %v669_v40  ;;  %v905_v48 = vmul.f32 %v1376_v35, %v709_v41 }
 0x11b   : > { %v858_v49 = vmul.f32 %v1283_v38, %v592_v45  ;;  %v874_v50 = vmul.f32 %v1315_v39, %v632_v46 }
 0x11c   : > { %953 = vst [vmem:[%s1572_s21 + $0x168] sm:$0xff] %v889_v47 }
 0x11d   : > { %969 = vst [vmem:[%s1572_s21 + $0x1e8] sm:$0xff] %v905_v48 }
 0x11e   : > { %922 = vst [vmem:[%s1572_s21 + $0x70] sm:$0xff] %v858_v49 }
 0x11f   : > { %938 = vst [vmem:[%s1572_s21 + $0xf0] sm:$0xff] %v874_v50  ;;  %v671_v55 = vpop.f32.mrf.mxu2  ;;  %v711_v56 = vpop.f32.mrf.mxu3 }
 0x120   : > { %v672_v59 = vadd.f32 %v1564_v42, %v671_v55  ;;  %v712_v60 = vadd.f32 %v1564_v42, %v711_v56  ;;  %v593_v61 = vpop.f32.mrf.mxu0  ;;  %v633_v62 = vpop.f32.mrf.mxu1 }
 0x121   : > { %v594_v63 = vadd.f32 %v1564_v42, %v593_v61  ;;  %v634_v0 = vadd.f32 %v1564_v42, %v633_v62 }
 0x122   : > { %v890_v1 = vmul.f32 %v1347_v53, %v672_v59  ;;  %v906_v2 = vmul.f32 %v1379_v54, %v712_v60 }
 0x123   : > { %v859_v3 = vmul.f32 %v1284_v57, %v594_v63  ;;  %v875_v4 = vmul.f32 %v1316_v58, %v634_v0 }
 0x124   : > { %954 = vst [vmem:[%s1572_s21 + $0x170] sm:$0xff] %v890_v1 }
 0x125   : > { %970 = vst [vmem:[%s1572_s21 + $0x1f0] sm:$0xff] %v906_v2 }
 0x126   : > { %923 = vst [vmem:[%s1572_s21 + $0x78] sm:$0xff] %v859_v3 }
 0x127   : > { %939 = vst [vmem:[%s1572_s21 + $0xf8] sm:$0xff] %v875_v4  ;;  %v673_v7 = vpop.f32.mrf.mxu2  ;;  %v713_v8 = vpop.f32.mrf.mxu3 }
 0x128   : > { %v674_v9 = vadd.f32 %v1564_v42, %v673_v7  ;;  %v714_v10 = vadd.f32 %v1564_v42, %v713_v8 }
 0x12a   : > { %v891_v11 = vmul.f32 %v1348_v5, %v674_v9  ;;  %v907_v12 = vmul.f32 %v1380_v6, %v714_v10 }
 0x12c   : > { %955 = vst [vmem:[%s1572_s21 + $0x178] sm:$0xff] %v891_v11 }
 0x12d   : > { %971 = vst [vmem:[%s1572_s21 + $0x1f8] sm:$0xff] %v907_v12 }
 0x12e PF: > { %s14_s15 = sadd.s32 1, %s1451_s15  }
 0x12f   : > { %p11_p4 = scmp.ge.s32.totalorder %s14_s15, 6  }
 0x131   :  { %13 = sbr.rel (!%p11_p4) target bundleno = 1 (0x1), region = 69 }

</bundles_post_ra>
